<compile_context>
chip_gen: v6e
topology: v6e:2x2x1
jax: 0.10.0
libtpu: 0.0.40
codegen_flags: <defaults>
</compile_context>

<pallas_src>
import functools

import jax
import jax.numpy as jnp
from jax.experimental import pallas as pl
from jax.experimental.pallas import tpu as pltpu

NEG_SLOPE = 0.01            # nn.LeakyReLU() default negative_slope
LANE = 128
_TM_TARGET = 512            # row tile of the streamed matrix
_TK_TARGET = 2048           # contraction tile (perf review: 2048-4096)
_MiB = 1024 * 1024


def _round_up(v, m):
    return ((v + m - 1) // m) * m


def _pad2d(x, rows, cols):
    pr, pc = rows - x.shape[0], cols - x.shape[1]
    if pr or pc:
        x = jnp.pad(x, ((0, pr), (0, pc)))
    return x


def _pad_dim(n):
    """Pad so the tile divisor search never collapses to 128 for large n."""
    if n <= 2 * LANE:
        return _round_up(n, LANE)
    if n <= 4 * LANE:
        return _round_up(n, 2 * LANE)
    return _round_up(n, 4 * LANE)          # multiple of 512


def _pick_tile(dim, target):
    """Largest multiple of 128 <= target that divides dim (dim % 128 == 0)."""
    t = max(LANE, (min(target, dim) // LANE) * LANE)
    while dim % t:
        t -= LANE
    return t


def _pick_row_tile(m, target):
    """Like _pick_tile, but capped so the 'parallel' row axis has >= 2 tiles
    (v7x has two TensorCores) whenever m allows it."""
    if m >= 2 * LANE:
        target = min(target, m // 2)
    return _pick_tile(m, target)


@functools.lru_cache(maxsize=1)
def _vmem_limit_bytes():
    """Per-generation VMEM budget: ~48 MiB on v7x (64 MiB physical),
    ~96 MiB on v5e/v6e (128 MiB physical). Conservative fallback if the
    hardware query is unavailable."""
    cap = None
    try:
        info = pltpu.get_tpu_info()
        for name in ("vmem_capacity_bytes", "vmem_size_bytes", "vmem_bytes"):
            cap = getattr(info, name, None)
            if cap:
                break
    except Exception:
        cap = None
    if not cap:
        cap = 64 * _MiB                     # conservative (v7x per-core VMEM)
    return int(min(100 * _MiB, 0.75 * cap))


def _stream_kernel(*refs, tk, h_resident, has_bias, fused, leaky_slope):
    """epilogue(A @ H [+ bias]); A streamed over grid (rows i, contraction k).

    Ref order: a, h, [bias], [w2, b2], out, acc."""
    refs = list(refs)
    a_ref = refs.pop(0)
    h_ref = refs.pop(0)
    b_ref = refs.pop(0) if has_bias else None
    if fused:
        w2_ref = refs.pop(0)
        b2_ref = refs.pop(0)
    else:
        w2_ref = b2_ref = None
    out_ref, acc_ref = refs

    k = pl.program_id(1)

    @pl.when(k == 0)
    def _init():
        if has_bias:
            # Fold the bias into the accumulator init (f32 broadcast).
            acc_ref[...] = jnp.broadcast_to(
                b_ref[...].astype(jnp.float32), acc_ref.shape)
        else:
            acc_ref[...] = jnp.zeros_like(acc_ref)

    a_tile = a_ref[...]
    if a_tile.dtype != h_ref.dtype:
        # Narrow A stream (int8 / fp8): the VPU upcast hides under the DMA
        # in this HBM-bound kernel while halving the dominant A traffic.
        a_tile = a_tile.astype(h_ref.dtype)
    if h_resident:
        # H is VMEM-resident; take the aligned k-slice (offset read).
        start = pl.multiple_of(k * tk, tk)
        h_tile = h_ref[pl.ds(start, tk), :]
    else:
        h_tile = h_ref[...]
    acc_ref[...] += jnp.dot(a_tile, h_tile, preferred_element_type=jnp.float32)

    @pl.when(k == pl.num_programs(1) - 1)
    def _finalize():
        acc = acc_ref[...]
        if leaky_slope is not None:
            acc = jnp.where(acc > 0, acc, leaky_slope * acc)
        if fused:
            # Fused second linear: the MXU is idle in this mem-bound kernel,
            # so (tm, hidden) @ (hidden, out) + b2 here is free and removes a
            # whole pallas_call plus the X1 HBM round trip.
            h2 = jnp.dot(acc.astype(w2_ref.dtype), w2_ref[...],
                         preferred_element_type=jnp.float32)
            h2 = h2 + b2_ref[...].astype(jnp.float32)
            out_ref[...] = h2.astype(out_ref.dtype)
        else:
            out_ref[...] = acc.astype(out_ref.dtype)


def _stream_matmul(a, h, *, bias=None, w2=None, b2=None, leaky_slope=None,
                   out_dtype=jnp.float32, tm_target=_TM_TARGET,
                   tk_target=_TK_TARGET):
    """epilogue(a @ h [+ bias]); epilogue = optional LeakyReLU then optional
    fused `@ w2 + b2`.  a: (M, K) streamed; h: (K, C) resident when it fits;
    bias: (1, C); w2: (C, C2); b2: (1, C2). All dims multiples of 128."""
    m, kdim = a.shape
    kdim2, c = h.shape
    assert kdim == kdim2
    fused = w2 is not None
    has_bias = bias is not None
    out_c = w2.shape[1] if fused else c

    tm = _pick_row_tile(m, tm_target)
    tk = _pick_tile(kdim, tk_target)
    grid = (m // tm, kdim // tk)

    vmem_limit = _vmem_limit_bytes()
    # Conservative VMEM budget: assume the pipeliner double-buffers every
    # input block (constant-index blocks are only DMA'd once, but we budget
    # their 2 buffers rather than forcing pl.Buffered(1) compile paths).
    fixed = (2 * tm * tk * a.dtype.itemsize                       # A tiles
             + tm * c * 4                                         # f32 acc
             + 2 * tm * out_c * jnp.dtype(out_dtype).itemsize)    # out tiles
    if has_bias:
        fixed += 2 * c * bias.dtype.itemsize
    if fused:
        fixed += 2 * (c * out_c + out_c) * w2.dtype.itemsize
    h_resident = (fixed + 2 * kdim * c * h.dtype.itemsize
                  <= int(0.85 * vmem_limit))

    in_specs = [
        # A: streamed (tm, tk) tiles, double-buffered by the pipeliner.
        pl.BlockSpec((tm, tk), lambda i, k: (i, k)),
    ]
    if h_resident:
        # Constant index map: fetched once, VMEM-resident across the grid.
        in_specs.append(pl.BlockSpec((kdim, c), lambda i, k: (0, 0)))
    else:
        # Guarded fallback for graphs whose H does not fit VMEM.
        in_specs.append(pl.BlockSpec((tk, c), lambda i, k: (k, 0)))
    operands = [a, h]
    if has_bias:
        in_specs.append(pl.BlockSpec((1, c), lambda i, k: (0, 0)))
        operands.append(bias)
    if fused:
        in_specs.append(pl.BlockSpec((c, out_c), lambda i, k: (0, 0)))
        in_specs.append(pl.BlockSpec((1, out_c), lambda i, k: (0, 0)))
        operands += [w2, b2]

    kernel = functools.partial(_stream_kernel, tk=tk, h_resident=h_resident,
                               has_bias=has_bias, fused=fused,
                               leaky_slope=leaky_slope)
    return pl.pallas_call(
        kernel,
        out_shape=jax.ShapeDtypeStruct((m, out_c), out_dtype),
        grid_spec=pltpu.PrefetchScalarGridSpec(
            num_scalar_prefetch=0,
            grid=grid,
            in_specs=in_specs,
            out_specs=pl.BlockSpec((tm, out_c), lambda i, k: (i, 0)),
            scratch_shapes=[pltpu.VMEM((tm, c), jnp.float32)],
        ),
        compiler_params=pltpu.CompilerParams(
            dimension_semantics=("parallel", "arbitrary"),
            vmem_limit_bytes=vmem_limit,
        ),
    )(*operands)


def gcn_prepare(x, a, w1, b1, w2, b2, *, compute_dtype=jnp.bfloat16,
                a_dtype=None):
    """Pad + cast all operands once (hoisted out of the per-forward path so
    A's pad/cast HBM pass is not re-paid every call).  `a_dtype` may narrow
    the streamed adjacency (e.g. jnp.int8 for a 0/1 adjacency; fp8 on v7x) —
    only use it when A's values are exactly (or tolerably) representable.
    Linear weights are given pre-transposed: w1 (in, hidden), w2 (hidden, out)."""
    n, in_dim = x.shape
    hidden = w1.shape[1]
    out_dim = w2.shape[1]

    n_p = _pad_dim(n)
    din_p = _round_up(in_dim, LANE)
    dh_p = _round_up(hidden, LANE)
    do_p = _round_up(out_dim, LANE)

    a_dtype = compute_dtype if a_dtype is None else a_dtype
    # Zero padding is exact: padded rows/cols of A are zero, so padded
    # (bias-carrying) rows of H never contribute to real outputs.
    x_p = _pad2d(x, n_p, din_p).astype(compute_dtype)
    a_p = _pad2d(a, n_p, n_p).astype(a_dtype)
    w1_p = _pad2d(w1, din_p, dh_p).astype(compute_dtype)
    w2_p = _pad2d(w2, dh_p, do_p).astype(compute_dtype)
    b1_p = jnp.pad(b1, (0, dh_p - hidden)).reshape(1, -1).astype(jnp.float32)
    b2_p = jnp.pad(b2, (0, do_p - out_dim)).reshape(1, -1).astype(jnp.float32)
    return (x_p, a_p, w1_p, b1_p, w2_p, b2_p), (n, out_dim)


def gcn_forward_padded(x_p, a_p, w1_p, b1_p, w2_p, b2_p, *,
                       out_dtype=jnp.float32):
    """Forward on pre-padded / pre-cast operands; returns the padded output."""
    compute_dtype = x_p.dtype
    # Phase 1: H1 = x @ W1 + b1                 (tiny feature matmul)
    h1 = _stream_matmul(x_p, w1_p, bias=b1_p, out_dtype=compute_dtype)
    # Phase 2 (fused): H2 = LeakyReLU(a @ H1) @ W2 + b2
    #   streams A once; X1 never leaves VMEM.
    h2 = _stream_matmul(a_p, h1, w2=w2_p, b2=b2_p, leaky_slope=NEG_SLOPE,
                        out_dtype=compute_dtype)
    # Phase 3: out = a @ H2                      (streams A once more)
    return _stream_matmul(a_p, h2, out_dtype=out_dtype)


def gcn_forward(x, a, w1, b1, w2, b2, *, compute_dtype=jnp.bfloat16,
                a_dtype=None):
    """Convenience one-shot wrapper (pads/casts inline)."""
    ops, (n, out_dim) = gcn_prepare(x, a, w1, b1, w2, b2,
                                    compute_dtype=compute_dtype,
                                    a_dtype=a_dtype)
    out = gcn_forward_padded(*ops, out_dtype=jnp.float32)
    return out[:n, :out_dim]


def gcn_reference(x, a, w1, b1, w2, b2):
    h = x @ w1 + b1
    x1 = a @ h
    x1 = jnp.where(x1 > 0, x1, NEG_SLOPE * x1)
    return a @ (x1 @ w2 + b2)


if __name__ == "__main__":
    N = 8          # number of graph nodes
    IN_DIM = 16
    HIDDEN = 32
    OUT_DIM = 8

    key = jax.random.PRNGKey(0)
    kx, ka, kw1, kb1, kw2, kb2 = jax.random.split(key, 6)

    x = jax.random.normal(kx, (N, IN_DIM), dtype=jnp.float32)
    a = jax.random.normal(ka, (N, N), dtype=jnp.float32)

    # Linear weights stored pre-transposed: (in_features, out_features).
    w1 = jax.random.normal(kw1, (IN_DIM, HIDDEN), dtype=jnp.float32) * 0.1
    b1 = jax.random.normal(kb1, (HIDDEN,), dtype=jnp.float32) * 0.1
    w2 = jax.random.normal(kw2, (HIDDEN, OUT_DIM), dtype=jnp.float32) * 0.1
    b2 = jax.random.normal(kb2, (OUT_DIM,), dtype=jnp.float32) * 0.1

    ref = gcn_reference(x, a, w1, b1, w2, b2)

    # 1) f32 compute path: tight check.
    out_f32 = jax.block_until_ready(
        gcn_forward(x, a, w1, b1, w2, b2, compute_dtype=jnp.float32))
    assert out_f32.shape == (N, OUT_DIM)
    assert jnp.allclose(out_f32, ref, atol=1e-4, rtol=1e-4)

    # 2) Default bf16-fed MXU path (f32 accumulate), with the A pad+cast
    #    hoisted out of the per-forward path and the padded forward jitted.
    ops, (n_real, do_real) = gcn_prepare(x, a, w1, b1, w2, b2)
    ops = jax.block_until_ready(ops)          # pad/cast paid once, reusable
    fwd = jax.jit(gcn_forward_padded)
    out = jax.block_until_ready(fwd(*ops))[:n_real, :do_real]
    assert out.shape == (N, OUT_DIM)
    assert jnp.allclose(out, ref, atol=5e-2, rtol=5e-2)

    # 3) Binary adjacency streamed as int8 (exact for 0/1 values): halves the
    #    dominant A HBM stream on v5e/v6e; on v7x fp8 plays the same role.
    a_bin = (jax.random.uniform(ka, (N, N)) < 0.4).astype(jnp.float32)
    ref_bin = gcn_reference(x, a_bin, w1, b1, w2, b2)
    out_bin = jax.block_until_ready(
        gcn_forward(x, a_bin, w1, b1, w2, b2, a_dtype=jnp.int8))
    assert out_bin.shape == (N, OUT_DIM)
    assert jnp.allclose(out_bin, ref_bin, atol=5e-2, rtol=5e-2)

    print("KERNEL_OK")
</pallas_src>

<mosaic_0001>
module attributes {stable_mosaic.version = 11 : i64} {
  func.func @_stream_kernel(%arg0: i32, %arg1: i32, %arg2: memref<128x128xf32, #tpu.memory_space<vmem>>, %arg3: memref<128x128xf32, #tpu.memory_space<vmem>>, %arg4: memref<1x128xf32, #tpu.memory_space<vmem>>, %arg5: memref<128x128xf32, #tpu.memory_space<vmem>>, %arg6: memref<128x128xf32, #tpu.memory_space<vmem>>) attributes {dimension_semantics = [#tpu.dimension_semantics<parallel>, #tpu.dimension_semantics<arbitrary>], iteration_bounds = array<i64: 1, 1>, scalar_prefetch = 0 : i64, scratch_operands = 1 : i64, tpu.core_type = #tpu.core_type<tc>, window_params = [{transform_indices = @transform_0, window_bounds = array<i64: 128, 128>}, {pipeline_mode = #tpu.pipeline_mode<synchronous>, transform_indices = @transform_1, window_bounds = array<i64: 128, 128>}, {pipeline_mode = #tpu.pipeline_mode<synchronous>, transform_indices = @transform_2, window_bounds = array<i64: 1, 128>}, {transform_indices = @transform_3, window_bounds = array<i64: 128, 128>}]} {
    %c0_i32 = arith.constant 0 : i32
    %0 = arith.cmpi eq, %arg1, %c0_i32 : i32
    %1 = arith.extui %0 : i1 to i32
    %c0_i32_0 = arith.constant 0 : i32
    %2 = arith.cmpi ne, %1, %c0_i32_0 : i32
    scf.if %2 {
      %c0_9 = arith.constant 0 : index
      %c0_10 = arith.constant 0 : index
      %15 = vector.load %arg4[%c0_9, %c0_10] : memref<1x128xf32, #tpu.memory_space<vmem>>, vector<1x128xf32>
      %16 = vector.shape_cast %15 : vector<1x128xf32> to vector<1x128xf32>
      %17 = vector.broadcast %16 : vector<1x128xf32> to vector<128x128xf32>
      %c0_11 = arith.constant 0 : index
      %c0_12 = arith.constant 0 : index
      %18 = vector.load %arg6[%c0_11, %c0_12] : memref<128x128xf32, #tpu.memory_space<vmem>>, vector<128x128xf32>
      tpu.vector_store %arg6[%c0_11, %c0_12], %17 {strides = array<i32>} : memref<128x128xf32, #tpu.memory_space<vmem>>, vector<128x128xf32>,
    } else {
    }
    %c0 = arith.constant 0 : index
    %c0_1 = arith.constant 0 : index
    %3 = vector.load %arg2[%c0, %c0_1] : memref<128x128xf32, #tpu.memory_space<vmem>>, vector<128x128xf32>
    %c128_i32 = arith.constant 128 : i32
    %4 = arith.muli %arg1, %c128_i32 : i32
    %5 = tpu.assume_multiple %4, 128 : i32
    %6 = arith.index_cast %5 : i32 to index
    %c0_2 = arith.constant 0 : index
    %7 = vector.load %arg3[%6, %c0_2] : memref<128x128xf32, #tpu.memory_space<vmem>>, vector<128x128xf32>
    %c0_3 = arith.constant 0 : index
    %c0_4 = arith.constant 0 : index
    %8 = vector.load %arg6[%c0_3, %c0_4] : memref<128x128xf32, #tpu.memory_space<vmem>>, vector<128x128xf32>
    %cst = arith.constant dense<0.000000e+00> : vector<128x128xf32>
    %9 = tpu.matmul %3, %7, %cst {dimension_numbers = #tpu.dot_dimension_numbers<[1], [0], [0], [1], [0, 0, 1, 1], [], []>} : vector<128x128xf32>, vector<128x128xf32>, vector<128x128xf32> -> vector<128x128xf32>
    %10 = arith.addf %8, %9 : vector<128x128xf32>
    %c0_5 = arith.constant 0 : index
    %c0_6 = arith.constant 0 : index
    %11 = vector.load %arg6[%c0_5, %c0_6] : memref<128x128xf32, #tpu.memory_space<vmem>>, vector<128x128xf32>
    tpu.vector_store %arg6[%c0_5, %c0_6], %10 {strides = array<i32>} : memref<128x128xf32, #tpu.memory_space<vmem>>, vector<128x128xf32>,
    %c0_i32_7 = arith.constant 0 : i32
    %12 = arith.cmpi eq, %arg1, %c0_i32_7 : i32
    %13 = arith.extui %12 : i1 to i32
    %c0_i32_8 = arith.constant 0 : i32
    %14 = arith.cmpi ne, %13, %c0_i32_8 : i32
    scf.if %14 {
      %c0_9 = arith.constant 0 : index
      %c0_10 = arith.constant 0 : index
      %15 = vector.load %arg6[%c0_9, %c0_10] : memref<128x128xf32, #tpu.memory_space<vmem>>, vector<128x128xf32>
      %c0_11 = arith.constant 0 : index
      %c0_12 = arith.constant 0 : index
      %16 = vector.load %arg5[%c0_11, %c0_12] : memref<128x128xf32, #tpu.memory_space<vmem>>, vector<128x128xf32>
      tpu.vector_store %arg5[%c0_11, %c0_12], %15 {strides = array<i32>} : memref<128x128xf32, #tpu.memory_space<vmem>>, vector<128x128xf32>,
    } else {
    }
    return
  }
  func.func @transform_0(%arg0: i32, %arg1: i32) -> (i32, i32) {
    %c0_i32 = arith.constant 0 : i32
    return %arg0, %arg1 : i32, i32
  }
  func.func @transform_1(%arg0: i32, %arg1: i32) -> (i32, i32) {
    %c0_i32 = arith.constant 0 : i32
    %c0_i32_0 = arith.constant 0 : i32
    %c0_i32_1 = arith.constant 0 : i32
    return %c0_i32, %c0_i32_0 : i32, i32
  }
  func.func @transform_2(%arg0: i32, %arg1: i32) -> (i32, i32) {
    %c0_i32 = arith.constant 0 : i32
    %c0_i32_0 = arith.constant 0 : i32
    %c0_i32_1 = arith.constant 0 : i32
    return %c0_i32, %c0_i32_0 : i32, i32
  }
  func.func @transform_3(%arg0: i32, %arg1: i32) -> (i32, i32) {
    %c0_i32 = arith.constant 0 : i32
    %c0_i32_0 = arith.constant 0 : i32
    return %arg0, %c0_i32 : i32, i32
  }
}

</mosaic_0001>

<bundles_post_ra>
// kernel: tpu_custom_call.1
= control target key start
LH: loop header
LB: loop body
LE: loop exit
PB: predicated region body
PF: predicated region fallthrough
CT: control target
= control target key end

     0   :  { %8 = vsyncpa [#allocation4], 0  ;;  %s588_s0 = inlined_call_operand.hbm [shape: f32[128,128], index: 0, kind: input, shape index: {}]   ;;  %s589_s1 = inlined_call_operand.hbm [shape: f32[128,128], index: 1, kind: input, shape index: {}]   ;;  %s590_s2 = inlined_call_operand.vmem [shape: f32[1,128], index: 2, kind: input, shape index: {}]   ;;  %s591_s3 = inlined_call_operand.hbm [shape: f32[128,128], index: 3, kind: output, shape index: {}]  }
   0x1   :  { %9 = vsyncpa [#allocation7], 0 }
   0x2   :  { %10 = vsyncpa [#allocation5], 0  ;;  %s542_s12 = smov [#allocation3]  }
   0x3   :  { %s16_s13 = sshll.u32 %s542_s12, 4  ;;  %s17_s13 = int_to_ptr.vmem [resolvable:$true] %s16_s13 }
   0x4   :  { %s484_s14 = scalar_lea.vmem %s17_s13, 2048  ;;  %p489_p1 = scmp.lt.s32.totalorder %s17_s13, %s17_s13 }
   0x5   :  { %p485_p0 = scmp.ne.s32.totalorder %s17_s13, %s484_s14  ;;  %p490_p2 = scmp.lt.s32.totalorder %s484_s14, %s484_s14 }
   0x7   :  { %p491_p3 = por %p490_p2, %p489_p1 }
   0x9   :  { %p492_p4 = pnand %p491_p3, %p485_p0 }
   0xb   :  { %495 = shalt.err (!%p492_p4)
}
   0xc   :  { %s543_s15 = smov 128   ;;  %s544_s16 = smov 8  }
   0xd   :  { %22 = dma.hbm_to_vmem [thread:$0]  %s588_s0, 2048, %s17_s13, [#allocation4], %s543_s15, %s543_s15, %s544_s16  }
   0xe   :  { %s545_s19 = smov [#allocation6]  }
   0xf   :  { %s28_s20 = sshll.u32 %s545_s19, 4  ;;  %s29_s20 = int_to_ptr.vmem [resolvable:$true] %s28_s20 }
  0x10   :  { %s504_s21 = scalar_lea.vmem %s29_s20, 2048  ;;  %p509_p6 = scmp.lt.s32.totalorder %s29_s20, %s29_s20 }
  0x11   :  { %p505_p5 = scmp.ne.s32.totalorder %s29_s20, %s504_s21  ;;  %p510_p7 = scmp.lt.s32.totalorder %s504_s21, %s504_s21 }
  0x13   :  { %p511_p8 = por %p510_p7, %p509_p6 }
  0x15   :  { %p512_p9 = pnand %p511_p8, %p505_p5 }
  0x17   :  { %515 = shalt.err (!%p512_p9)
}
  0x18   :  { %34 = dma.hbm_to_vmem [thread:$0]  %s589_s1, 2048, %s29_s20, [#allocation7], %s543_s15, %s543_s15, %s544_s16  }
  0x19   :  { %536 = dma.done.wait [#allocation4], 2048  }
  0x1a   :  { %537 = vsyncadd [#allocation4], 4294965248 }
  0x1b   :  { %538 = dma.done.wait [#allocation7], 2048  }
  0x1c   :  { %539 = vsyncadd [#allocation7], 4294965248  ;;  %v103_v0 = vld [vmem:[#allocation6 + $0x78] sm:$0xff]  ;;  %v102_v1 = vld [vmem:[#allocation6 + $0x70] sm:$0xff] }
  0x1d   :  { %383 = vmatprep.subr.mxu0 %v103_v0  ;;  %439 = vmatprep.subr.mxu1 %v103_v0  ;;  %v101_v2 = vld [vmem:[#allocation6 + $0x68] sm:$0xff]  ;;  %v100_v3 = vld [vmem:[#allocation6 + $0x60] sm:$0xff]  ;;  %v99_v4 = vld [vmem:[#allocation6 + $0x58] sm:$0xff] }
  0x1e   :  { %384 = vmatpush3.msra.mxu0 %v103_v0  ;;  %455 = vmatpush3.msra.mxu1 %v103_v0  ;;  %v98_v5 = vld [vmem:[#allocation6 + $0x50] sm:$0xff]  ;;  %v97_v6 = vld [vmem:[#allocation6 + $0x48] sm:$0xff]  ;;  %v96_v7 = vld [vmem:[#allocation6 + $0x40] sm:$0xff] }
  0x1f   :  { %385 = vmatprep.subr.mxu0 %v102_v1  ;;  %440 = vmatprep.subr.mxu1 %v102_v1  ;;  %v95_v8 = vld [vmem:[#allocation6 + $0x38] sm:$0xff]  ;;  %v94_v9 = vld [vmem:[#allocation6 + $0x30] sm:$0xff]  ;;  %v93_v10 = vld [vmem:[#allocation6 + $0x28] sm:$0xff] }
  0x20   :  { %386 = vmatpush3.msra.mxu0 %v102_v1  ;;  %456 = vmatpush3.msra.mxu1 %v102_v1  ;;  %v92_v11 = vld [vmem:[#allocation6 + $0x20] sm:$0xff]  ;;  %v91_v12 = vld [vmem:[#allocation6 + $0x18] sm:$0xff]  ;;  %v90_v13 = vld [vmem:[#allocation6 + $0x10] sm:$0xff] }
  0x21   :  { %387 = vmatprep.subr.mxu0 %v101_v2  ;;  %441 = vmatprep.subr.mxu1 %v101_v2  ;;  %v89_v14 = vld [vmem:[#allocation6 + $0x8] sm:$0xff]  ;;  %v88_v15 = vld [vmem:[#allocation6] sm:$0xff]  ;;  %v72_v20 = vld [vmem:[#allocation3 + $0x10] sm:$0xff] }
  0x22   :  { %388 = vmatpush3.msra.mxu0 %v101_v2  ;;  %457 = vmatpush3.msra.mxu1 %v101_v2  ;;  %v70_v16 = vld [vmem:[#allocation3] sm:$0xff]  ;;  %v71_v18 = vld [vmem:[#allocation3 + $0x8] sm:$0xff]  ;;  %v80_v21 = vld [vmem:[#allocation3 + $0x50] sm:$0xff] }
  0x23   :  { %389 = vmatprep.subr.mxu0 %v100_v3  ;;  %442 = vmatprep.subr.mxu1 %v100_v3  ;;  %v78_v17 = vld [vmem:[#allocation3 + $0x40] sm:$0xff]  ;;  %v79_v19 = vld [vmem:[#allocation3 + $0x48] sm:$0xff]  ;;  %v73_v22 = vld [vmem:[#allocation3 + $0x18] sm:$0xff] }
  0x24   :  { %390 = vmatpush3.msra.mxu0 %v100_v3  ;;  %458 = vmatpush3.msra.mxu1 %v100_v3  ;;  %v81_v23 = vld [vmem:[#allocation3 + $0x58] sm:$0xff]  ;;  %v74_v24 = vld [vmem:[#allocation3 + $0x20] sm:$0xff]  ;;  %v75_v26 = vld [vmem:[#allocation3 + $0x28] sm:$0xff] }
  0x25   :  { %391 = vmatprep.subr.mxu0 %v99_v4  ;;  %443 = vmatprep.subr.mxu1 %v99_v4  ;;  %v82_v25 = vld [vmem:[#allocation3 + $0x60] sm:$0xff]  ;;  %v83_v27 = vld [vmem:[#allocation3 + $0x68] sm:$0xff]  ;;  %v76_v28 = vld [vmem:[#allocation3 + $0x30] sm:$0xff] }
  0x26   :  { %392 = vmatpush3.msra.mxu0 %v99_v4  ;;  %459 = vmatpush3.msra.mxu1 %v99_v4  ;;  %v84_v29 = vld [vmem:[#allocation3 + $0x70] sm:$0xff]  ;;  %v77_v30 = vld [vmem:[#allocation3 + $0x38] sm:$0xff]  ;;  %v350_v32 = vld [vmem:[%s590_s2] ss:$0 sm:$0xff]  ;;  %s546_s2 = smov [#allocation8]  }
  0x27   :  { %393 = vmatprep.subr.mxu0 %v98_v5  ;;  %444 = vmatprep.subr.mxu1 %v98_v5  ;;  %v85_v31 = vld [vmem:[#allocation3 + $0x78] sm:$0xff]  ;;  %s337_s24 = sshll.u32 %s546_s2, 4  ;;  %s338_s24 = int_to_ptr.vmem [resolvable:$true] %s337_s24 }
  0x28   :  { %394 = vmatpush3.msra.mxu0 %v98_v5  ;;  %460 = vmatpush3.msra.mxu1 %v98_v5  ;;  %s516_s25 = scalar_lea.vmem %s338_s24, 2048  ;;  %p521_p11 = scmp.lt.s32.totalorder %s338_s24, %s338_s24 }
  0x29   :  { %395 = vmatprep.subr.mxu0 %v97_v6  ;;  %445 = vmatprep.subr.mxu1 %v97_v6  ;;  %p517_p10 = scmp.ne.s32.totalorder %s338_s24, %s516_s25  ;;  %p522_p12 = scmp.lt.s32.totalorder %s516_s25, %s516_s25 }
  0x2a   :  { %396 = vmatpush3.msra.mxu0 %v97_v6  ;;  %461 = vmatpush3.msra.mxu1 %v97_v6 }
  0x2b   :  { %397 = vmatprep.subr.mxu0 %v96_v7  ;;  %446 = vmatprep.subr.mxu1 %v96_v7  ;;  %p523_p13 = por %p522_p12, %p521_p11 }
  0x2c   :  { %398 = vmatpush3.msra.mxu0 %v96_v7  ;;  %462 = vmatpush3.msra.mxu1 %v96_v7 }
  0x2d   :  { %399 = vmatprep.subr.mxu0 %v95_v8  ;;  %447 = vmatprep.subr.mxu1 %v95_v8  ;;  %p524_p0 = pnand %p523_p13, %p517_p10 }
  0x2e   :  { %400 = vmatpush3.msra.mxu0 %v95_v8  ;;  %463 = vmatpush3.msra.mxu1 %v95_v8 }
  0x2f   :  { %401 = vmatprep.subr.mxu0 %v94_v9  ;;  %448 = vmatprep.subr.mxu1 %v94_v9 }
  0x30   :  { %402 = vmatpush3.msra.mxu0 %v94_v9  ;;  %464 = vmatpush3.msra.mxu1 %v94_v9 }
  0x31   :  { %403 = vmatprep.subr.mxu0 %v93_v10  ;;  %449 = vmatprep.subr.mxu1 %v93_v10 }
  0x32   :  { %404 = vmatpush3.msra.mxu0 %v93_v10  ;;  %465 = vmatpush3.msra.mxu1 %v93_v10 }
  0x33   :  { %405 = vmatprep.subr.mxu0 %v92_v11  ;;  %450 = vmatprep.subr.mxu1 %v92_v11 }
  0x34   :  { %406 = vmatpush3.msra.mxu0 %v92_v11  ;;  %466 = vmatpush3.msra.mxu1 %v92_v11 }
  0x35   :  { %407 = vmatprep.subr.mxu0 %v91_v12  ;;  %451 = vmatprep.subr.mxu1 %v91_v12 }
  0x36   :  { %408 = vmatpush3.msra.mxu0 %v91_v12  ;;  %467 = vmatpush3.msra.mxu1 %v91_v12 }
  0x37   :  { %409 = vmatprep.subr.mxu0 %v90_v13  ;;  %452 = vmatprep.subr.mxu1 %v90_v13 }
  0x38   :  { %410 = vmatpush3.msra.mxu0 %v90_v13  ;;  %468 = vmatpush3.msra.mxu1 %v90_v13 }
  0x39   :  { %411 = vmatprep.subr.mxu0 %v89_v14  ;;  %453 = vmatprep.subr.mxu1 %v89_v14 }
  0x3a   :  { %412 = vmatpush3.msra.mxu0 %v89_v14  ;;  %469 = vmatpush3.msra.mxu1 %v89_v14 }
  0x3b   :  { %413 = vmatprep.subr.mxu0 %v88_v15  ;;  %454 = vmatprep.subr.mxu1 %v88_v15 }
  0x3c   :  { %414 = vmatpush3.msra.mxu0 %v88_v15  ;;  %470 = vmatpush3.msra.mxu1 %v88_v15 }
  0x3d   :  { %415 = vmatprep.mubr.f32.mxu0 %v70_v16  ;;  %427 = vmatprep.mubr.f32.mxu1 %v78_v17 }
  0x3e   :  { %416 = vmatmul.mubr.f32.vlgmr.msra.gmra.mxu0 %v71_v18  ;;  %428 = vmatmul.mubr.f32.vlgmr.msra.gmra.mxu1 %v79_v19 }
  0x3f   :  { %418 = vmatprep.mubr.f32.mxu0 %v72_v20  ;;  %430 = vmatprep.mubr.f32.mxu1 %v80_v21 }
  0x42   :  { %419 = vmatmul.mubr.f32.gmra.mxu0 %v73_v22  ;;  %431 = vmatmul.mubr.f32.gmra.mxu1 %v81_v23 }
  0x43   :  { %421 = vmatprep.mubr.f32.mxu0 %v74_v24  ;;  %433 = vmatprep.mubr.f32.mxu1 %v82_v25 }
  0x46   :  { %422 = vmatmul.mubr.f32.gmra.mxu0 %v75_v26  ;;  %434 = vmatmul.mubr.f32.gmra.mxu1 %v83_v27 }
  0x47   :  { %424 = vmatprep.mubr.f32.mxu0 %v76_v28  ;;  %436 = vmatprep.mubr.f32.mxu1 %v84_v29 }
  0x4a   :  { %425 = vmatmul.mubr.f32.gmra.mxu0 %v77_v30  ;;  %437 = vmatmul.mubr.f32.gmra.mxu1 %v85_v31 }
  0xfe   :  { %v417_v33 = vpop.f32.mrf.mxu0  ;;  %v429_v34 = vpop.f32.mrf.mxu1 }
  0xff   :  { %v266_v35 = vadd.f32 %v417_v33, %v350_v32  ;;  %v274_v36 = vadd.f32 %v429_v34, %v350_v32 }
 0x100   :  { %v186_v37 = vpop.f32.mrf.mxu0  ;;  %v226_v38 = vpop.f32.mrf.mxu1 }
 0x101   :  { %317 = vst [vmem:[#allocation8 + $0x8] sm:$0xff] %v266_v35  ;;  %325 = vst [vmem:[#allocation8 + $0x48] sm:$0xff] %v274_v36  ;;  %v265_v39 = vadd.f32 %v350_v32, %v186_v37  ;;  %v273_v40 = vadd.f32 %v350_v32, %v226_v38 }
 0x102   :  { %v420_v41 = vpop.f32.mrf.mxu0  ;;  %v432_v42 = vpop.f32.mrf.mxu1 }
 0x103   :  { %316 = vst [vmem:[#allocation8] sm:$0xff] %v265_v39  ;;  %324 = vst [vmem:[#allocation8 + $0x40] sm:$0xff] %v273_v40  ;;  %v268_v43 = vadd.f32 %v420_v41, %v350_v32  ;;  %v276_v44 = vadd.f32 %v432_v42, %v350_v32 }
 0x104   :  { %v196_v45 = vpop.f32.mrf.mxu0  ;;  %v236_v46 = vpop.f32.mrf.mxu1 }
 0x105   :  { %319 = vst [vmem:[#allocation8 + $0x18] sm:$0xff] %v268_v43  ;;  %327 = vst [vmem:[#allocation8 + $0x58] sm:$0xff] %v276_v44  ;;  %v267_v47 = vadd.f32 %v350_v32, %v196_v45  ;;  %v275_v48 = vadd.f32 %v350_v32, %v236_v46 }
 0x106   :  { %v423_v49 = vpop.f32.mrf.mxu0  ;;  %v435_v50 = vpop.f32.mrf.mxu1 }
 0x107   :  { %318 = vst [vmem:[#allocation8 + $0x10] sm:$0xff] %v267_v47  ;;  %326 = vst [vmem:[#allocation8 + $0x50] sm:$0xff] %v275_v48  ;;  %v270_v51 = vadd.f32 %v423_v49, %v350_v32  ;;  %v278_v52 = vadd.f32 %v435_v50, %v350_v32 }
 0x108   :  { %v206_v53 = vpop.f32.mrf.mxu0  ;;  %v246_v54 = vpop.f32.mrf.mxu1 }
 0x109   :  { %321 = vst [vmem:[#allocation8 + $0x28] sm:$0xff] %v270_v51  ;;  %329 = vst [vmem:[#allocation8 + $0x68] sm:$0xff] %v278_v52  ;;  %v269_v55 = vadd.f32 %v350_v32, %v206_v53  ;;  %v277_v56 = vadd.f32 %v350_v32, %v246_v54 }
 0x10a   :  { %v426_v57 = vpop.f32.mrf.mxu0  ;;  %v438_v58 = vpop.f32.mrf.mxu1 }
 0x10b   :  { %320 = vst [vmem:[#allocation8 + $0x20] sm:$0xff] %v269_v55  ;;  %328 = vst [vmem:[#allocation8 + $0x60] sm:$0xff] %v277_v56  ;;  %v272_v59 = vadd.f32 %v426_v57, %v350_v32  ;;  %v280_v60 = vadd.f32 %v438_v58, %v350_v32 }
 0x10c   :  { %v216_v61 = vpop.f32.mrf.mxu0  ;;  %v256_v62 = vpop.f32.mrf.mxu1 }
 0x10d   :  { %323 = vst [vmem:[#allocation8 + $0x38] sm:$0xff] %v272_v59  ;;  %331 = vst [vmem:[#allocation8 + $0x78] sm:$0xff] %v280_v60  ;;  %v271_v63 = vadd.f32 %v350_v32, %v216_v61  ;;  %v279_v0 = vadd.f32 %v350_v32, %v256_v62 }
 0x10f   :  { %322 = vst [vmem:[#allocation8 + $0x30] sm:$0xff] %v271_v63  ;;  %330 = vst [vmem:[#allocation8 + $0x70] sm:$0xff] %v279_v0 }
 0x110   :  { %527 = shalt.err (!%p524_p0)
}
 0x111   :  { %343 = dma.vmem_to_hbm [thread:$0]  %s338_s24, 2048, %s591_s3, [#allocation5], %s543_s15, %s543_s15, %s544_s16  }
 0x112   :  { %540 = dma.done.wait [#allocation5], 2048  }
 0x113   :  { %541 = vsyncadd [#allocation5], 4294965248 }
 0x114   :  { %347 = vsyncpa [#allocation4], 1 }
 0x115   :  { %348 = vsyncpa [#allocation7], 1 }
 0x116   :  { %349 = vsyncpa [#allocation5], 1 }

</bundles_post_ra>
